<compile_context>
chip_gen: v5e
topology: v5e:2x2
jax: 0.10.0
libtpu: 0.0.40
codegen_flags: <defaults>
</compile_context>

<pallas_src>
import functools

import jax
import jax.numpy as jnp
from jax.experimental import pallas as pl
from jax.experimental.pallas import tpu as pltpu


_SLAB_WIDTH = 128   # lane-dense slab / output width
_ROW_ALIGN = 16     # bf16 packs 16 sublanes per vreg: keep weight blocks aligned


# ---------------------------------------------------------------------------
# activation (selected by name, applied inside the fused kernel)
# ---------------------------------------------------------------------------
def _act(name, negative_slope=0.2):
    if name == "relu":
        return lambda x: jnp.maximum(x, 0.0)
    if name == "leaky_relu":
        return lambda x: jnp.where(x >= 0.0, x, negative_slope * x)
    if name == "sigmoid":
        return jax.nn.sigmoid
    if name == "tanh":
        return jnp.tanh
    raise ValueError(name)


def _round_up(x, m):
    return ((x + m - 1) // m) * m


# ---------------------------------------------------------------------------
# static layer layout (shared by pack_params and the kernel)
# ---------------------------------------------------------------------------
def _layer_dims(num_features, hidden, num_classes, num_layers, coarse_layers):
    """(in_dim, out_dim) for every dense layer, in flattened order."""
    dims = []
    d = [num_features] + [hidden] * (num_layers - 1) + [hidden]
    dims += [(d[l], d[l + 1]) for l in range(num_layers)]            # transform
    for _ in range(coarse_layers):                                    # gnns[i]
        d = [hidden] * (num_layers + 1)
        dims += [(d[l], d[l + 1]) for l in range(num_layers)]
    dims.append((2 * hidden, hidden))                                 # classifier1
    dims.append((hidden, num_classes))                                # classifier2
    return dims


def _build_layout(dims):
    """(w_row_offset, in_dim, out_dim_slice, bias_row) per dense layer.

    The last layer (classifier2) is sliced at the full padded slab width so the
    kernel's final store is a lane-dense [G_pad, 128] unmasked vst."""
    layout = []
    row = 0
    for i, (din, dout) in enumerate(dims):
        dslice = _SLAB_WIDTH if i == len(dims) - 1 else dout
        layout.append((row, din, dslice, i))
        row += _round_up(din, _ROW_ALIGN)
    return tuple(layout), row


def pack_params(params):
    """Pack all weights into one bf16 [R,128] slab + all biases into one f32
    [L,128] slab (2 DMAs instead of ~16).  Zero padding past each layer's
    out_dim / aligned rows is never read (static slices in the kernel)."""
    flat = list(params["transform"])
    for layer in params["gnns"]:
        flat += list(layer)
    flat.append(params["classifier1"])
    flat.append(params["classifier2"])

    w_blocks, b_rows = [], []
    for w, b in flat:
        din, dout = w.shape
        w_blocks.append(jnp.pad(
            w, ((0, _round_up(din, _ROW_ALIGN) - din), (0, _SLAB_WIDTH - dout))))
        b_rows.append(jnp.pad(b, ((0, 0), (0, _SLAB_WIDTH - dout))))
    w_slab = jnp.concatenate(w_blocks, axis=0).astype(jnp.bfloat16)
    b_slab = jnp.concatenate(b_rows, axis=0).astype(jnp.float32)
    return w_slab, b_slab


# ---------------------------------------------------------------------------
# the single fused Pallas kernel
# ---------------------------------------------------------------------------
def _fused_forward_kernel(adj_ref, x_ref, anorm_ref, at_ref, w_ref, b_ref,
                          o_ref, mx_sc, *,
                          layout, num_layers, coarse_layers, hidden,
                          num_graphs, num_graphs_pad, act):
    bf16 = jnp.bfloat16
    f32 = jnp.float32

    adj = adj_ref[...]          # [N, N]     bf16 (MXU operand)
    assign_norm = anorm_ref[...]  # [G_pad, N] bf16 (rows sum to 1 per graph)
    assign_t = at_ref[...]      # [N, G_pad] f32  (column g = graph-g node mask)
    wslab = w_ref[...]          # [R, 128]   bf16
    bslab = b_ref[...]          # [L, 128]   f32

    li = [0]

    def next_wb():
        r0, din, dout, brow = layout[li[0]]
        li[0] += 1
        w = wslab[r0:r0 + din, 0:dout]       # static, 16-row-aligned slice
        b = bslab[brow:brow + 1, 0:dout]     # static slice, f32 [1, dout]
        return w, b, din, dout

    def gcn_stack(h):
        # num_layers GCNConvs (Ahat @ X @ W + b), ReLU between inner layers
        # (PyG BasicGNN style).  bf16 MXU operands, f32 accumulation.
        for l in range(num_layers):
            w, b, din, dout = next_wb()
            h_bf = h.astype(bf16)
            if din <= dout:
                # (Ahat @ X) @ W cheaper when in_dim <= out_dim
                h = jnp.dot(
                    jnp.dot(adj, h_bf, preferred_element_type=f32).astype(bf16),
                    w, preferred_element_type=f32) + b
            else:
                # Ahat @ (X @ W) cheaper when in_dim > out_dim
                h = jnp.dot(
                    adj, jnp.dot(h_bf, w, preferred_element_type=f32).astype(bf16),
                    preferred_element_type=f32) + b
            if l < num_layers - 1:
                h = jnp.maximum(h, 0.0)
        return h

    # x = activate(transform(x, edge_index))
    h = act(gcn_stack(x_ref[...]))

    # loop-invariant readout prep (masks hoisted; counts/normalization already
    # folded into assign_norm in the wrapper)
    masks = [assign_t[:, g:g + 1] > 0.0 for g in range(num_graphs)]   # [N,1] each
    neg = jnp.float32(-1e30)   # finite fill -- no -inf poisoning of accumulators

    mx_sc[...] = jnp.zeros_like(mx_sc)     # padded graph rows stay 0
    mean_acc = jnp.zeros((num_graphs_pad, hidden), f32)
    max_acc = jnp.zeros((num_graphs_pad, hidden), f32)

    for i in range(coarse_layers):
        # x = activate(gnns[i](x, edge_index))
        h = act(gcn_stack(h))
        if i != coarse_layers - 1:
            # TODO(synk): POPool `Pooling` source unavailable -> pass-through
            # (x, edge_index, batch unchanged).
            # global_mean_pool as one MXU matmul with the normalized one-hot.
            mean = jnp.dot(assign_norm, h.astype(bf16),
                           preferred_element_type=f32)                # [G_pad, H]
            # global_max_pool: per-graph 2D sublane reduce (no [G,N,H] broadcast)
            for g in range(num_graphs):
                mg = jnp.where(masks[g], h, neg)                      # [N, H]
                mx_sc[pl.ds(g, 1), :] = jnp.max(mg, axis=0, keepdims=True)
            mx = mx_sc[...]                                           # [G_pad, H]
            # readout_x += cat([relu(mean_pool), relu(max_pool)], -1)
            # (ReLU here is F.relu per the reference, independent of `activate`)
            mean_acc = mean_acc + jnp.maximum(mean, 0.0)
            max_acc = max_acc + jnp.maximum(mx, 0.0)

    # classifier1 on concat([mean, max], -1) done as two half-matmuls
    # (avoids an in-kernel lane concatenate)
    w1, b1, _, _ = next_wb()                 # [2H, H]
    out = (jnp.dot(mean_acc.astype(bf16), w1[0:hidden, :],
                   preferred_element_type=f32)
           + jnp.dot(max_acc.astype(bf16), w1[hidden:2 * hidden, :],
                     preferred_element_type=f32)
           + b1)
    # TODO(synk): F.dropout only exercised in eval mode here (identity).
    out = act(out)

    w2, b2, _, _ = next_wb()                 # [H, 128] zero-padded past classes
    out = jnp.dot(out.astype(bf16), w2, preferred_element_type=f32) + b2

    o_ref[...] = out                         # single lane-dense full-block store


# ---------------------------------------------------------------------------
# plain-JAX glue (inside jit): scatter-free graph preprocessing
# ---------------------------------------------------------------------------
def normalized_adjacency(edge_index, num_nodes):
    """D^-1/2 (A + I) D^-1/2 built with a one-hot matmul (no XLA scatter)."""
    src, dst = edge_index[0], edge_index[1]
    node_ids = jnp.arange(num_nodes)
    src_oh = (src[:, None] == node_ids[None, :]).astype(jnp.float32)   # [E, N]
    dst_oh = (dst[:, None] == node_ids[None, :]).astype(jnp.float32)   # [E, N]
    adj = jnp.minimum(jnp.dot(src_oh.T, dst_oh), 1.0)      # clamp duplicate edges
    adj = jnp.maximum(adj, jnp.eye(num_nodes, dtype=jnp.float32))      # self loops
    deg = jnp.sum(adj, axis=1)
    d_inv_sqrt = jax.lax.rsqrt(jnp.maximum(deg, 1.0))
    return adj * d_inv_sqrt[:, None] * d_inv_sqrt[None, :]


# ---------------------------------------------------------------------------
# forward builder: one jitted function wrapping one pallas_call
# ---------------------------------------------------------------------------
def build_forward(*, num_features, hidden_size, num_classes, coarse_layers,
                  num_layers, num_graphs, activate, negative_slope):
    dims = _layer_dims(num_features, hidden_size, num_classes,
                       num_layers, coarse_layers)
    layout, _ = _build_layout(dims)
    num_graphs_pad = _round_up(max(num_graphs, 8), 8)

    kernel = functools.partial(
        _fused_forward_kernel,
        layout=layout,
        num_layers=num_layers,
        coarse_layers=coarse_layers,
        hidden=hidden_size,
        num_graphs=num_graphs,
        num_graphs_pad=num_graphs_pad,
        act=_act(activate, negative_slope),
    )

    vmem = pl.BlockSpec(memory_space=pltpu.MemorySpace.VMEM)

    @jax.jit
    def forward(w_slab, b_slab, x, edge_index, batch):
        num_nodes = x.shape[0]
        adj = normalized_adjacency(edge_index, num_nodes)               # [N, N]
        assign = (batch[None, :] == jnp.arange(num_graphs_pad)[:, None]
                  ).astype(jnp.float32)                                 # [G_pad, N]
        counts = jnp.maximum(jnp.sum(assign, axis=1, keepdims=True), 1.0)
        assign_norm = (assign / counts).astype(jnp.bfloat16)            # [G_pad, N]
        assign_t = jnp.transpose(assign)                                # [N, G_pad]

        out = pl.pallas_call(
            kernel,
            out_shape=jax.ShapeDtypeStruct((num_graphs_pad, _SLAB_WIDTH),
                                           jnp.float32),
            in_specs=[vmem] * 6,
            out_specs=vmem,
            scratch_shapes=[pltpu.VMEM((num_graphs_pad, hidden_size),
                                       jnp.float32)],
            compiler_params=pltpu.CompilerParams(
                vmem_limit_bytes=32 * 1024 * 1024),
        )(adj.astype(jnp.bfloat16), x.astype(jnp.bfloat16),
          assign_norm, assign_t, w_slab, b_slab)
        return out[:num_graphs, :num_classes]

    return forward


# ---------------------------------------------------------------------------
# parameter init (PyTorch nn.Linear-style uniform)
# ---------------------------------------------------------------------------
def init_dense(key, fan_in, fan_out):
    kw, kb = jax.random.split(key)
    scale = 1.0 / jnp.sqrt(jnp.float32(fan_in))
    w = jax.random.uniform(kw, (fan_in, fan_out), jnp.float32, -scale, scale)
    b = jax.random.uniform(kb, (1, fan_out), jnp.float32, -scale, scale)
    return w, b


def init_gcn(key, in_dim, hidden, num_layers, out_dim):
    dims = [in_dim] + [hidden] * (num_layers - 1) + [out_dim]
    keys = jax.random.split(key, num_layers)
    return [init_dense(keys[i], dims[i], dims[i + 1]) for i in range(num_layers)]


def init_model(key, num_features, hidden, num_classes, coarse_layers, num_layers):
    keys = jax.random.split(key, coarse_layers + 3)
    return {
        "transform": init_gcn(keys[0], num_features, hidden, num_layers, hidden),
        "gnns": [
            init_gcn(keys[1 + i], hidden, hidden, num_layers, hidden)
            for i in range(coarse_layers)
        ],
        "classifier1": init_dense(keys[coarse_layers + 1], 2 * hidden, hidden),
        "classifier2": init_dense(keys[coarse_layers + 2], hidden, num_classes),
    }


# ---------------------------------------------------------------------------
# main
# ---------------------------------------------------------------------------
if __name__ == "__main__":
    # config (matches MyModel.__init__ signature semantics, GNN='GCN')
    num_features = 8
    hidden_size = 32
    num_classes = 4
    coarse_layers = 2
    num_layers = 2
    activate = "relu"
    negative_slope = 0.2

    key = jax.random.PRNGKey(0)
    k_params, k_x = jax.random.split(key)

    # 2 graphs of 8 nodes each, ring topology (both edge directions)
    num_graphs = 2
    nodes_per_graph = 8
    num_nodes = num_graphs * nodes_per_graph
    edges = []
    for g in range(num_graphs):
        base = nodes_per_graph * g
        for i in range(nodes_per_graph):
            a, b = base + i, base + (i + 1) % nodes_per_graph
            edges.append((a, b))
            edges.append((b, a))
    edge_index = jnp.array(edges, dtype=jnp.int32).T                 # [2, 32]
    batch = jnp.array([g for g in range(num_graphs)
                       for _ in range(nodes_per_graph)], dtype=jnp.int32)  # [16]
    x = jax.random.normal(k_x, (num_nodes, num_features), jnp.float32)

    params = init_model(k_params, num_features, hidden_size, num_classes,
                        coarse_layers, num_layers)
    w_slab, b_slab = pack_params(params)   # one-time packing into 2 slabs

    forward = build_forward(
        num_features=num_features,
        hidden_size=hidden_size,
        num_classes=num_classes,
        coarse_layers=coarse_layers,
        num_layers=num_layers,
        num_graphs=num_graphs,
        activate=activate,
        negative_slope=negative_slope,
    )

    out = forward(w_slab, b_slab, x, edge_index, batch)
    out = jax.block_until_ready(out)
    assert out.shape == (num_graphs, num_classes), out.shape
    assert bool(jnp.all(jnp.isfinite(out)))
    print("KERNEL_OK")
</pallas_src>

<mosaic_0001>
module attributes {stable_mosaic.version = 11 : i64} {
  func.func @_fused_forward_kernel(%arg0: memref<16x16xbf16, #tpu.memory_space<vmem>>, %arg1: memref<16x8xbf16, #tpu.memory_space<vmem>>, %arg2: memref<8x16xbf16, #tpu.memory_space<vmem>>, %arg3: memref<16x8xf32, #tpu.memory_space<vmem>>, %arg4: memref<272x128xbf16, #tpu.memory_space<vmem>>, %arg5: memref<8x128xf32, #tpu.memory_space<vmem>>, %arg6: memref<8x128xf32, #tpu.memory_space<vmem>>, %arg7: memref<8x32xf32, #tpu.memory_space<vmem>>) attributes {dimension_semantics = [], scalar_prefetch = 0 : i64, scratch_operands = 1 : i64, tpu.core_type = #tpu.core_type<tc>} {
    %c0 = arith.constant 0 : index
    %c0_0 = arith.constant 0 : index
    %0 = vector.load %arg0[%c0, %c0_0] : memref<16x16xbf16, #tpu.memory_space<vmem>>, vector<16x16xbf16>
    %c0_1 = arith.constant 0 : index
    %c0_2 = arith.constant 0 : index
    %1 = vector.load %arg2[%c0_1, %c0_2] : memref<8x16xbf16, #tpu.memory_space<vmem>>, vector<8x16xbf16>
    %c0_3 = arith.constant 0 : index
    %c0_4 = arith.constant 0 : index
    %2 = vector.load %arg3[%c0_3, %c0_4] : memref<16x8xf32, #tpu.memory_space<vmem>>, vector<16x8xf32>
    %c0_5 = arith.constant 0 : index
    %c0_6 = arith.constant 0 : index
    %3 = vector.load %arg4[%c0_5, %c0_6] : memref<272x128xbf16, #tpu.memory_space<vmem>>, vector<272x128xbf16>
    %c0_7 = arith.constant 0 : index
    %c0_8 = arith.constant 0 : index
    %4 = vector.load %arg5[%c0_7, %c0_8] : memref<8x128xf32, #tpu.memory_space<vmem>>, vector<8x128xf32>
    %c0_9 = arith.constant 0 : index
    %c0_10 = arith.constant 0 : index
    %5 = vector.load %arg1[%c0_9, %c0_10] : memref<16x8xbf16, #tpu.memory_space<vmem>>, vector<16x8xbf16>
    %6 = vector.extract_strided_slice %3 {offsets = [0, 0], sizes = [8, 32], strides = [1, 1]} : vector<272x128xbf16> to vector<8x32xbf16>
    %7 = vector.extract_strided_slice %4 {offsets = [0, 0], sizes = [1, 32], strides = [1, 1]} : vector<8x128xf32> to vector<1x32xf32>
    %cst = arith.constant dense<0.000000e+00> : vector<16x8xf32>
    %8 = tpu.matmul %0, %5, %cst {dimension_numbers = #tpu.dot_dimension_numbers<[1], [0], [0], [1], [0, 0, 1, 1], [], []>} : vector<16x16xbf16>, vector<16x8xbf16>, vector<16x8xf32> -> vector<16x8xf32>
    %9 = arith.truncf %8 : vector<16x8xf32> to vector<16x8xbf16>
    %cst_11 = arith.constant dense<0.000000e+00> : vector<16x32xf32>
    %10 = tpu.matmul %9, %6, %cst_11 {dimension_numbers = #tpu.dot_dimension_numbers<[1], [0], [0], [1], [0, 0, 1, 1], [], []>} : vector<16x8xbf16>, vector<8x32xbf16>, vector<16x32xf32> -> vector<16x32xf32>
    %11 = vector.broadcast %7 : vector<1x32xf32> to vector<16x32xf32>
    %12 = arith.addf %10, %11 : vector<16x32xf32>
    %cst_12 = arith.constant 0.000000e+00 : f32
    %13 = vector.broadcast %cst_12 : f32 to vector<16x32xf32>
    %14 = arith.maximumf %12, %13 : vector<16x32xf32>
    %15 = vector.extract_strided_slice %3 {offsets = [16, 0], sizes = [32, 32], strides = [1, 1]} : vector<272x128xbf16> to vector<32x32xbf16>
    %16 = vector.extract_strided_slice %4 {offsets = [1, 0], sizes = [1, 32], strides = [1, 1]} : vector<8x128xf32> to vector<1x32xf32>
    %17 = arith.truncf %14 : vector<16x32xf32> to vector<16x32xbf16>
    %cst_13 = arith.constant dense<0.000000e+00> : vector<16x32xf32>
    %18 = tpu.matmul %0, %17, %cst_13 {dimension_numbers = #tpu.dot_dimension_numbers<[1], [0], [0], [1], [0, 0, 1, 1], [], []>} : vector<16x16xbf16>, vector<16x32xbf16>, vector<16x32xf32> -> vector<16x32xf32>
    %19 = arith.truncf %18 : vector<16x32xf32> to vector<16x32xbf16>
    %cst_14 = arith.constant dense<0.000000e+00> : vector<16x32xf32>
    %20 = tpu.matmul %19, %15, %cst_14 {dimension_numbers = #tpu.dot_dimension_numbers<[1], [0], [0], [1], [0, 0, 1, 1], [], []>} : vector<16x32xbf16>, vector<32x32xbf16>, vector<16x32xf32> -> vector<16x32xf32>
    %21 = vector.broadcast %16 : vector<1x32xf32> to vector<16x32xf32>
    %22 = arith.addf %20, %21 : vector<16x32xf32>
    %cst_15 = arith.constant 0.000000e+00 : f32
    %23 = vector.broadcast %cst_15 : f32 to vector<16x32xf32>
    %24 = arith.maximumf %22, %23 : vector<16x32xf32>
    %25 = vector.extract_strided_slice %2 {offsets = [0, 0], sizes = [16, 1], strides = [1, 1]} : vector<16x8xf32> to vector<16x1xf32>
    %cst_16 = arith.constant 0.000000e+00 : f32
    %26 = vector.broadcast %cst_16 : f32 to vector<16x1xf32>
    %27 = arith.cmpf ogt, %25, %26 : vector<16x1xf32>
    %28 = vector.extract_strided_slice %2 {offsets = [0, 1], sizes = [16, 1], strides = [1, 1]} : vector<16x8xf32> to vector<16x1xf32>
    %cst_17 = arith.constant 0.000000e+00 : f32
    %29 = vector.broadcast %cst_17 : f32 to vector<16x1xf32>
    %30 = arith.cmpf ogt, %28, %29 : vector<16x1xf32>
    %cst_18 = arith.constant 0.000000e+00 : f32
    %31 = vector.broadcast %cst_18 : f32 to vector<8x32xf32>
    %c0_19 = arith.constant 0 : index
    %c0_20 = arith.constant 0 : index
    %32 = vector.load %arg7[%c0_19, %c0_20] : memref<8x32xf32, #tpu.memory_space<vmem>>, vector<8x32xf32>
    tpu.vector_store %arg7[%c0_19, %c0_20], %31 {strides = array<i32>} : memref<8x32xf32, #tpu.memory_space<vmem>>, vector<8x32xf32>,
    %cst_21 = arith.constant 0.000000e+00 : f32
    %33 = vector.broadcast %cst_21 : f32 to vector<8x32xf32>
    %cst_22 = arith.constant 0.000000e+00 : f32
    %34 = vector.broadcast %cst_22 : f32 to vector<8x32xf32>
    %35 = vector.extract_strided_slice %3 {offsets = [48, 0], sizes = [32, 32], strides = [1, 1]} : vector<272x128xbf16> to vector<32x32xbf16>
    %36 = vector.extract_strided_slice %4 {offsets = [2, 0], sizes = [1, 32], strides = [1, 1]} : vector<8x128xf32> to vector<1x32xf32>
    %37 = arith.truncf %24 : vector<16x32xf32> to vector<16x32xbf16>
    %cst_23 = arith.constant dense<0.000000e+00> : vector<16x32xf32>
    %38 = tpu.matmul %0, %37, %cst_23 {dimension_numbers = #tpu.dot_dimension_numbers<[1], [0], [0], [1], [0, 0, 1, 1], [], []>} : vector<16x16xbf16>, vector<16x32xbf16>, vector<16x32xf32> -> vector<16x32xf32>
    %39 = arith.truncf %38 : vector<16x32xf32> to vector<16x32xbf16>
    %cst_24 = arith.constant dense<0.000000e+00> : vector<16x32xf32>
    %40 = tpu.matmul %39, %35, %cst_24 {dimension_numbers = #tpu.dot_dimension_numbers<[1], [0], [0], [1], [0, 0, 1, 1], [], []>} : vector<16x32xbf16>, vector<32x32xbf16>, vector<16x32xf32> -> vector<16x32xf32>
    %41 = vector.broadcast %36 : vector<1x32xf32> to vector<16x32xf32>
    %42 = arith.addf %40, %41 : vector<16x32xf32>
    %cst_25 = arith.constant 0.000000e+00 : f32
    %43 = vector.broadcast %cst_25 : f32 to vector<16x32xf32>
    %44 = arith.maximumf %42, %43 : vector<16x32xf32>
    %45 = vector.extract_strided_slice %3 {offsets = [80, 0], sizes = [32, 32], strides = [1, 1]} : vector<272x128xbf16> to vector<32x32xbf16>
    %46 = vector.extract_strided_slice %4 {offsets = [3, 0], sizes = [1, 32], strides = [1, 1]} : vector<8x128xf32> to vector<1x32xf32>
    %47 = arith.truncf %44 : vector<16x32xf32> to vector<16x32xbf16>
    %cst_26 = arith.constant dense<0.000000e+00> : vector<16x32xf32>
    %48 = tpu.matmul %0, %47, %cst_26 {dimension_numbers = #tpu.dot_dimension_numbers<[1], [0], [0], [1], [0, 0, 1, 1], [], []>} : vector<16x16xbf16>, vector<16x32xbf16>, vector<16x32xf32> -> vector<16x32xf32>
    %49 = arith.truncf %48 : vector<16x32xf32> to vector<16x32xbf16>
    %cst_27 = arith.constant dense<0.000000e+00> : vector<16x32xf32>
    %50 = tpu.matmul %49, %45, %cst_27 {dimension_numbers = #tpu.dot_dimension_numbers<[1], [0], [0], [1], [0, 0, 1, 1], [], []>} : vector<16x32xbf16>, vector<32x32xbf16>, vector<16x32xf32> -> vector<16x32xf32>
    %51 = vector.broadcast %46 : vector<1x32xf32> to vector<16x32xf32>
    %52 = arith.addf %50, %51 : vector<16x32xf32>
    %cst_28 = arith.constant 0.000000e+00 : f32
    %53 = vector.broadcast %cst_28 : f32 to vector<16x32xf32>
    %54 = arith.maximumf %52, %53 : vector<16x32xf32>
    %55 = arith.truncf %54 : vector<16x32xf32> to vector<16x32xbf16>
    %cst_29 = arith.constant dense<0.000000e+00> : vector<8x32xf32>
    %56 = tpu.matmul %1, %55, %cst_29 {dimension_numbers = #tpu.dot_dimension_numbers<[1], [0], [0], [1], [0, 0, 1, 1], [], []>} : vector<8x16xbf16>, vector<16x32xbf16>, vector<8x32xf32> -> vector<8x32xf32>
    %cst_30 = arith.constant -1.000000e+30 : f32
    %57 = vector.shape_cast %27 : vector<16x1xi1> to vector<16x1xi1>
    %58 = vector.broadcast %57 : vector<16x1xi1> to vector<16x32xi1>
    %59 = vector.broadcast %cst_30 : f32 to vector<16x32xf32>
    %60 = arith.select %58, %54, %59 : vector<16x32xi1>, vector<16x32xf32>
    %cst_31 = arith.constant dense<0xFF800000> : vector<32xf32>
    %61 = vector.multi_reduction <maximumf>, %60, %cst_31 [0] : vector<16x32xf32> to vector<32xf32>
    %62 = vector.shape_cast %61 : vector<32xf32> to vector<1x32xf32>
    %c0_32 = arith.constant 0 : index
    %c0_33 = arith.constant 0 : index
    %63 = vector.load %arg7[%c0_32, %c0_33] : memref<8x32xf32, #tpu.memory_space<vmem>>, vector<1x32xf32>
    tpu.vector_store %arg7[%c0_32, %c0_33], %62 {strides = array<i32>} : memref<8x32xf32, #tpu.memory_space<vmem>>, vector<1x32xf32>,
    %cst_34 = arith.constant -1.000000e+30 : f32
    %64 = vector.shape_cast %30 : vector<16x1xi1> to vector<16x1xi1>
    %65 = vector.broadcast %64 : vector<16x1xi1> to vector<16x32xi1>
    %66 = vector.broadcast %cst_34 : f32 to vector<16x32xf32>
    %67 = arith.select %65, %54, %66 : vector<16x32xi1>, vector<16x32xf32>
    %cst_35 = arith.constant dense<0xFF800000> : vector<32xf32>
    %68 = vector.multi_reduction <maximumf>, %67, %cst_35 [0] : vector<16x32xf32> to vector<32xf32>
    %69 = vector.shape_cast %68 : vector<32xf32> to vector<1x32xf32>
    %c1 = arith.constant 1 : index
    %c0_36 = arith.constant 0 : index
    %70 = vector.load %arg7[%c1, %c0_36] : memref<8x32xf32, #tpu.memory_space<vmem>>, vector<1x32xf32>
    tpu.vector_store %arg7[%c1, %c0_36], %69 {strides = array<i32>} : memref<8x32xf32, #tpu.memory_space<vmem>>, vector<1x32xf32>,
    %c0_37 = arith.constant 0 : index
    %c0_38 = arith.constant 0 : index
    %71 = vector.load %arg7[%c0_37, %c0_38] : memref<8x32xf32, #tpu.memory_space<vmem>>, vector<8x32xf32>
    %cst_39 = arith.constant 0.000000e+00 : f32
    %72 = vector.broadcast %cst_39 : f32 to vector<8x32xf32>
    %73 = arith.maximumf %56, %72 : vector<8x32xf32>
    %74 = arith.addf %33, %73 : vector<8x32xf32>
    %cst_40 = arith.constant 0.000000e+00 : f32
    %75 = vector.broadcast %cst_40 : f32 to vector<8x32xf32>
    %76 = arith.maximumf %71, %75 : vector<8x32xf32>
    %77 = arith.addf %34, %76 : vector<8x32xf32>
    %78 = vector.extract_strided_slice %3 {offsets = [176, 0], sizes = [64, 32], strides = [1, 1]} : vector<272x128xbf16> to vector<64x32xbf16>
    %79 = vector.extract_strided_slice %4 {offsets = [6, 0], sizes = [1, 32], strides = [1, 1]} : vector<8x128xf32> to vector<1x32xf32>
    %80 = arith.truncf %74 : vector<8x32xf32> to vector<8x32xbf16>
    %81 = vector.extract_strided_slice %78 {offsets = [0, 0], sizes = [32, 32], strides = [1, 1]} : vector<64x32xbf16> to vector<32x32xbf16>
    %cst_41 = arith.constant dense<0.000000e+00> : vector<8x32xf32>
    %82 = tpu.matmul %80, %81, %cst_41 {dimension_numbers = #tpu.dot_dimension_numbers<[1], [0], [0], [1], [0, 0, 1, 1], [], []>} : vector<8x32xbf16>, vector<32x32xbf16>, vector<8x32xf32> -> vector<8x32xf32>
    %83 = arith.truncf %77 : vector<8x32xf32> to vector<8x32xbf16>
    %84 = vector.extract_strided_slice %78 {offsets = [32, 0], sizes = [32, 32], strides = [1, 1]} : vector<64x32xbf16> to vector<32x32xbf16>
    %cst_42 = arith.constant dense<0.000000e+00> : vector<8x32xf32>
    %85 = tpu.matmul %83, %84, %cst_42 {dimension_numbers = #tpu.dot_dimension_numbers<[1], [0], [0], [1], [0, 0, 1, 1], [], []>} : vector<8x32xbf16>, vector<32x32xbf16>, vector<8x32xf32> -> vector<8x32xf32>
    %86 = arith.addf %82, %85 : vector<8x32xf32>
    %87 = vector.broadcast %79 : vector<1x32xf32> to vector<8x32xf32>
    %88 = arith.addf %86, %87 : vector<8x32xf32>
    %cst_43 = arith.constant 0.000000e+00 : f32
    %89 = vector.broadcast %cst_43 : f32 to vector<8x32xf32>
    %90 = arith.maximumf %88, %89 : vector<8x32xf32>
    %91 = vector.extract_strided_slice %3 {offsets = [240, 0], sizes = [32, 128], strides = [1, 1]} : vector<272x128xbf16> to vector<32x128xbf16>
    %92 = vector.extract_strided_slice %4 {offsets = [7, 0], sizes = [1, 128], strides = [1, 1]} : vector<8x128xf32> to vector<1x128xf32>
    %93 = arith.truncf %90 : vector<8x32xf32> to vector<8x32xbf16>
    %cst_44 = arith.constant dense<0.000000e+00> : vector<8x128xf32>
    %94 = tpu.matmul %93, %91, %cst_44 {dimension_numbers = #tpu.dot_dimension_numbers<[1], [0], [0], [1], [0, 0, 1, 1], [], []>} : vector<8x32xbf16>, vector<32x128xbf16>, vector<8x128xf32> -> vector<8x128xf32>
    %95 = vector.broadcast %92 : vector<1x128xf32> to vector<8x128xf32>
    %96 = arith.addf %94, %95 : vector<8x128xf32>
    %c0_45 = arith.constant 0 : index
    %c0_46 = arith.constant 0 : index
    %97 = vector.load %arg6[%c0_45, %c0_46] : memref<8x128xf32, #tpu.memory_space<vmem>>, vector<8x128xf32>
    tpu.vector_store %arg6[%c0_45, %c0_46], %96 {strides = array<i32>} : memref<8x128xf32, #tpu.memory_space<vmem>>, vector<8x128xf32>,
    return
  }
}

</mosaic_0001>

<bundles_post_ra>
// kernel: forward.1
= control target key start
LH: loop header
LB: loop body
LE: loop exit
PB: predicated region body
PF: predicated region fallthrough
CT: control target
= control target key end

     0   :  { %11 = vsyncpa [#allocation4], 0  ;;  %s555_s24 = smov [#allocation3]   ;;  %s556_s26 = smov 64   ;;  %s644_s0 = inlined_call_operand.vmem [shape: bf16[16,16], index: 0, kind: input, shape index: {}]   ;;  %s645_s1 = inlined_call_operand.vmem [shape: bf16[16,8], index: 1, kind: input, shape index: {}]   ;;  %s646_s2 = inlined_call_operand.vmem [shape: bf16[8,16], index: 2, kind: input, shape index: {}]   ;;  %s647_s3 = inlined_call_operand.vmem [shape: f32[16,8], index: 3, kind: input, shape index: {}]   ;;  %s648_s4 = inlined_call_operand.hbm [shape: bf16[272,128], index: 4, kind: input, shape index: {}]   ;;  %s649_s5 = inlined_call_operand.vmem [shape: f32[8,128], index: 5, kind: input, shape index: {}]   ;;  %s650_s6 = inlined_call_operand.vmem [shape: f32[8,128], index: 6, kind: output, shape index: {}]  }
   0x1   :  { %s24_s23 = sshll.u32 %s648_s4, 4  ;;  %s26_s25 = sshll.u32 %s555_s24, 4  ;;  %s25_s23 = int_to_ptr.hbm [resolvable:$true] %s24_s23  ;;  %s27_s25 = int_to_ptr.vmem [resolvable:$true] %s26_s25 }
   0x2   :  { %s557_s27 = smov 4  }
   0x3   :  { %32 = dma.hbm_to_vmem [thread:$0]  %s25_s23, 2176, %s27_s25, [#allocation4], %s556_s26, %s556_s26, %s557_s27  }
   0x4   :  { %553 = dma.done.wait [#allocation4], 2176  }
   0x5   :  { %554 = vsyncadd [#allocation4], 4294965120  ;;  %v519_v0 = vld [vmem:[%s645_s1] sm:$0xff]  ;;  %vm84_vm0 = vcmask 130048   ;;  %v45_v2 = vld [vmem:[#allocation3] sm:$0xf] }
   0x6   :  { %v506_v1 = vld [vmem:[%s644_s0] sm:$0xff]  ;;  %95 = vmatpush.bf16.msra.mxu0 %v519_v0  ;;  %vm108_vm1 = vcmask 1043456   ;;  %vm104_vm2 = vcmask 64512   ;;  %v508_v16 = vld [vmem:[#allocation3 + $0x10] sm:$0xff]  ;;  %v507_v17 = vld [vmem:[#allocation3 + $0x8] sm:$0xff]  ;;  %vm157_vm3 = vcmask 261120  }
   0x7   :  { %v110_v3 = vsel %vm108_vm1, %v45_v2, 0  ;;  %v609_v7 = vld [vmem:[%s649_s5] sm:$0xff]  ;;  %167 = vmatpush.bf16.msra.mxu3 %v508_v16  ;;  %v510_v29 = vld [vmem:[#allocation3 + $0x20] sm:$0xff]  ;;  %v512_v42 = vld [vmem:[#allocation3 + $0x30] sm:$0xff]  ;;  %v558_v45 = vmov 1   ;;  %v559_v46 = vmov 0  }
   0x8   :  { %119 = vmatpush.bf16.msra.mxu1 %v110_v3  ;;  %v103_v9 = vperm.slane %v609_v7, 0  ;;  %v144_v22 = vperm.slane %v609_v7, 1  ;;  %v509_v30 = vld [vmem:[#allocation3 + $0x18] sm:$0xff]  ;;  %v196_v35 = vperm.slane %v609_v7, 2  ;;  %v511_v43 = vld [vmem:[#allocation3 + $0x28] sm:$0xff]  ;;  %527 = vset.pattern.permute.xlu1 %v558_v45  ;;  %v44_v48 = vld [vmem:[%s647_s3 + $0x8] sm:$0xff] }
   0x9   :  { %446 = vmatmul.msk.bf16.vlgmr.msra.gmra.mxu0 %vm84_vm0, %v506_v1  ;;  %v43_v44 = vld [vmem:[%s647_s3] sm:$0xff]  ;;  %526 = vset.pattern.permute.xlu0 %v559_v46  ;;  %vm178_vm5 = vcmp.gt.f32.partialorder %v44_v48, 0.0  ;;  %v560_v53 = vmov 0.0   ;;  %v516_v56 = vld [vmem:[#allocation3 + $0x70] sm:$0xff]  ;;  %v244_v57 = vperm.slane %v609_v7, 3  ;;  %v515_v59 = vld [vmem:[#allocation3 + $0x68] sm:$0xff] }
   0xa   :  { %vm177_vm4 = vcmp.gt.f32.partialorder %v43_v44, 0.0  ;;  %v294_v49 = vsel %vm178_vm5, 1, %v559_v46  ;;  %179 = vst.msk [vmem:[#allocation2] sm:$0xff] %vm157_vm3, %v560_v53  ;;  %v514_v2 = vld [vmem:[#allocation3 + $0x60] sm:$0xff]  ;;  %v42_v16 = vld [vmem:[%s646_s2] sm:$0xf] }
   0xb   :  { %168 = vmatpush.bf16.msra.mxu3 %v507_v17  ;;  %v293_v47 = vsel %vm177_vm4, 1, %v559_v46  ;;  %vm314_vm10 = vcmask 253952   ;;  %v403_v48 = vperm.slane %v609_v7, 7 }
   0xc   :  { %218 = vmatpush.bf16.msrb.mxu1 %v510_v29  ;;  %317 = vperm.xlu1 %527, %v293_v47  }
   0xd   :  { %296 = vperm.xlu0 %526, %v293_v47  }
   0xf   :  { %266 = vmatpush.bf16.msrb.mxu3 %v512_v42 }
  0x10   :  { %219 = vmatpush.bf16.msrb.mxu1 %v509_v30 }
  0x13   :  { %267 = vmatpush.bf16.msrb.mxu3 %v511_v43 }
  0x14   :  { %320 = vperm.xlu1 %527, %v294_v49  }
  0x15   :  { %299 = vperm.xlu0 %526, %v294_v49  }
  0x1d   :  { %528 = vset.pattern.permute.xlu0 %v558_v45 }
  0x7e   :  { %v318_v54 = vpop.permute.xlu1 %317 }
  0x7f   :  { %v297_v55 = vpop.permute.xlu0 %296  ;;  %vm322_vm6 = vcmp.eq.s32.totalorder %v318_v54, 1 }
  0x80   :  { %vm301_vm7 = vcmp.eq.s32.totalorder %v297_v55, 1 }
  0x86   :  { %v97_v4 = vpop.f32.mrf.mxu0  ;;  %v321_v62 = vpop.permute.xlu1 %320 }
  0x87   :  { %v300_v63 = vpop.permute.xlu0 %299  ;;  %vm323_vm8 = vcmp.eq.s32.totalorder %v321_v62, 1 }
  0x88   :  { %vm302_vm9 = vcmp.eq.s32.totalorder %v300_v63, 1 }
  0x8e   :  { %v99_v5 = vpop.f32.mrf.mxu0 }
  0x8f   :  { %v102_v6 = vpack.c.bf16 %v99_v5, %v97_v4 }
  0x91   :  { %447 = vmatmul.msk.bf16.vlgmr.msra.gmra.mxu1 %vm104_vm2, %v102_v6 }
  0x92   :  { %364 = vmatpush.bf16.msra.mxu1 %v516_v56 }
  0x96   :  { %365 = vmatpush.bf16.msra.mxu1 %v515_v59 }
 0x10e   :  { %v121_v8 = vpop.f32.mrf.mxu1 }
 0x10f   :  { %v122_v10 = vadd.f32 %v121_v8, %v103_v9 }
 0x111   :  { %v126_v13 = vmax.f32 %v122_v10, 0.0 }
 0x116   :  { %v123_v11 = vpop.f32.mrf.mxu1 }
 0x117   :  { %v124_v12 = vadd.f32 %v123_v11, %v103_v9 }
 0x119   :  { %v127_v14 = vmax.f32 %v124_v12, 0.0 }
 0x11b   :  { %v128_v15 = vpack.c.bf16 %v127_v14, %v126_v13 }
 0x11d   :  { %136 = vmatpush.bf16.msra.mxu2 %v128_v15 }
 0x120   :  { %448 = vmatmul.msk.bf16.vlgmr.msra.gmra.mxu2 %vm84_vm0, %v506_v1 }
 0x1a3   :  { %v138_v18 = vpop.f32.mrf.mxu2 }
 0x1ab   :  { %v140_v19 = vpop.f32.mrf.mxu2 }
 0x1ac   :  { %v143_v20 = vpack.c.bf16 %v140_v19, %v138_v18 }
 0x1ae   :  { %457 = vmatmul.msk.bf16.vlgmr.msra.gmra.mxu3 %vm157_vm3, %v143_v20 }
 0x231   :  { %v170_v21 = vpop.f32.mrf.mxu3 }
 0x232   :  { %v171_v23 = vadd.f32 %v170_v21, %v144_v22 }
 0x234   :  { %v175_v26 = vmax.f32 %v171_v23, 0.0 }
 0x239   :  { %v172_v24 = vpop.f32.mrf.mxu3 }
 0x23a   :  { %v173_v25 = vadd.f32 %v172_v24, %v144_v22 }
 0x23c   :  { %v176_v27 = vmax.f32 %v173_v25, 0.0 }
 0x23e   :  { %v180_v28 = vpack.c.bf16 %v176_v27, %v175_v26 }
 0x240   :  { %188 = vmatpush.bf16.msrb.mxu0 %v180_v28 }
 0x243   :  { %458 = vmatmul.msk.bf16.vlgmr.msrb.gmra.mxu0 %vm84_vm0, %v506_v1 }
 0x2c0   :  { %v190_v31 = vpop.f32.mrf.mxu0 }
 0x2c8   :  { %v192_v32 = vpop.f32.mrf.mxu0 }
 0x2c9   :  { %v195_v33 = vpack.c.bf16 %v192_v32, %v190_v31  ;;  %v513_v32 = vld [vmem:[#allocation3 + $0x58] sm:$0xff] }
 0x2cb   :  { %467 = vmatmul.msk.bf16.vlgmr.msrb.gmra.mxu1 %vm157_vm3, %v195_v33 }
 0x348   :  { %v221_v34 = vpop.f32.mrf.mxu1 }
 0x349   :  { %v222_v36 = vadd.f32 %v221_v34, %v196_v35 }
 0x34b   :  { %v226_v39 = vmax.f32 %v222_v36, 0.0 }
 0x350   :  { %v223_v37 = vpop.f32.mrf.mxu1 }
 0x351   :  { %v224_v38 = vadd.f32 %v223_v37, %v196_v35 }
 0x353   :  { %v227_v40 = vmax.f32 %v224_v38, 0.0 }
 0x355   :  { %v228_v41 = vpack.c.bf16 %v227_v40, %v226_v39  ;;  %v518_v39 = vld [vmem:[#allocation3 + $0x80] sm:$0xff]  ;;  %v517_v40 = vld [vmem:[#allocation3 + $0x78] sm:$0xff] }
 0x356   :  { %425 = vmatpush.bf16.msra.mxu3 %v518_v39 }
 0x357   :  { %236 = vmatpush.bf16.msrb.mxu2 %v228_v41  ;;  %v399_v41 = vperm.slane %v609_v7, 6 }
 0x35a   :  { %468 = vmatmul.msk.bf16.vlgmr.msrb.gmra.mxu2 %vm84_vm0, %v506_v1  ;;  %426 = vmatpush.bf16.msra.mxu3 %v517_v40 }
 0x35b   :  { %392 = vmatpush.bf16.msra.mxu2 %v514_v2 }
 0x35f   :  { %393 = vmatpush.bf16.msra.mxu2 %v513_v32 }
 0x3dd   :  { %v238_v50 = vpop.f32.mrf.mxu2 }
 0x3e5   :  { %v240_v51 = vpop.f32.mrf.mxu2 }
 0x3e6   :  { %v243_v52 = vpack.c.bf16 %v240_v51, %v238_v50 }
 0x3e8   :  { %477 = vmatmul.msk.bf16.vlgmr.msrb.gmra.mxu3 %vm157_vm3, %v243_v52 }
 0x46b   :  { %v269_v58 = vpop.f32.mrf.mxu3 }
 0x46c   :  { %v270_v60 = vadd.f32 %v269_v58, %v244_v57 }
 0x46e   :  { %v274_v61 = vmax.f32 %v270_v60, 0.0 }
 0x470   :  { %v324_v3 = vsel %vm322_vm6, %v274_v61, -1e+30  ;;  %v303_v4 = vsel %vm301_vm7, %v274_v61, -1e+30 }
 0x471   :  { %v326_v10 = vsel %vm157_vm3, %v324_v3, -inf  ;;  %v305_v11 = vsel %vm157_vm3, %v303_v4, -inf }
 0x473   :  { %v271_v0 = vpop.f32.mrf.mxu3 }
 0x474   :  { %v272_v1 = vadd.f32 %v271_v0, %v244_v57 }
 0x476   :  { %v275_v5 = vmax.f32 %v272_v1, 0.0 }
 0x478   :  { %v276_v6 = vpack.c.bf16 %v275_v5, %v274_v61  ;;  %v325_v8 = vsel %vm323_vm8, %v275_v5, -1e+30  ;;  %v304_v9 = vsel %vm302_vm9, %v275_v5, -1e+30 }
 0x479   :  { %v327_v12 = vsel %vm157_vm3, %v325_v8, -inf  ;;  %v306_v13 = vsel %vm157_vm3, %v304_v9, -inf }
 0x47a   :  { %v328_v14 = vmax.f32 %v326_v10, %v327_v12  ;;  %v307_v15 = vmax.f32 %v305_v11, %v306_v13  ;;  %287 = vmatpush.bf16.msra.mxu0 %v276_v6 }
 0x47c   :  { %v329_v17 = vrot.slane %v328_v14, 4  ;;  %v308_v18 = vrot.slane %v307_v15, 4 }
 0x47d   :  { %478 = vmatmul.msk.bf16.vlgmr.msra.gmra.mxu0 %vm84_vm0, %v42_v16 }
 0x47e   :  { %v330_v19 = vmax.f32 %v328_v14, %v329_v17  ;;  %v309_v20 = vmax.f32 %v307_v15, %v308_v18 }
 0x480   :  { %v331_v21 = vrot.slane %v330_v19, 2  ;;  %v310_v22 = vrot.slane %v309_v20, 2 }
 0x482   :  { %v332_v23 = vmax.f32 %v330_v19, %v331_v21  ;;  %v311_v24 = vmax.f32 %v309_v20, %v310_v22 }
 0x484   :  { %v333_v25 = vrot.slane %v332_v23, 1  ;;  %v312_v26 = vrot.slane %v311_v24, 1 }
 0x486   :  { %v334_v27 = vmax.f32 %v332_v23, %v333_v25  ;;  %v313_v28 = vmax.f32 %v311_v24, %v312_v26 }
 0x488   :  { %335 = vst.msk [vmem:[#allocation2 + $0x1] sm:$0x1] %vm314_vm10, %v334_v27 }
 0x489   :  { %315 = vst.msk [vmem:[#allocation2] sm:$0x1] %vm314_vm10, %v313_v28 }
 0x490   :  { %v336_v29 = vld [vmem:[#allocation2] sm:$0xff] }
 0x491   :  { %v339_v30 = vmax.f32 %v336_v29, 0.0 }
 0x493   :  { %v342_v31 = vpack.c.bf16 %v339_v30, %v339_v30 }
 0x495   :  { %487 = vmatmul.msk.bf16.vlgmr.msra.gmra.mxu1 %vm157_vm3, %v342_v31 }
 0x4fa   :  { %v289_v33 = vpop.f32.mrf.mxu0 }
 0x4fb   :  { %v337_v34 = vmax.f32 %v289_v33, 0.0 }
 0x4fd   :  { %v341_v35 = vpack.c.bf16 %v337_v34, %v337_v34 }
 0x4ff   :  { %496 = vmatmul.msk.bf16.vlgmr.msra.gmra.mxu2 %vm157_vm3, %v341_v35 }
 0x502   :  { %v291_v36 = vpop.f32.mrf.mxu0 }
 0x512   :  { %v367_v37 = vpop.f32.mrf.mxu1 }
 0x51a   :  { %v369_v38 = vpop.f32.mrf.mxu1 }
 0x582   :  { %v395_v42 = vpop.f32.mrf.mxu2 }
 0x583   :  { %v396_v43 = vadd.f32 %v395_v42, %v367_v37 }
 0x585   :  { %v400_v44 = vadd.f32 %v399_v41, %v396_v43 }
 0x587   :  { %v401_v45 = vmax.f32 %v400_v44, 0.0 }
 0x589   :  { %v402_v46 = vpack.c.bf16 %v401_v45, %v401_v45 }
 0x58a   :  { %v397_v47 = vpop.f32.mrf.mxu2 }
 0x58b   :  { %505 = vmatmul.msk.bf16.vlgmr.msra.gmra.mxu3 %vm157_vm3, %v402_v46 }
 0x60e   :  { %v428_v49 = vpop.f32.mrf.mxu3 }
 0x60f   :  { %v429_v50 = vadd.f32 %v428_v49, %v403_v48 }
 0x611   :  { %432 = vst [vmem:[%s650_s6] sm:$0xff] %v429_v50 }
 0x616   :  { %v430_v51 = vpop.f32.mrf.mxu3 }
 0x617   :  { %437 = vsyncpa [#allocation4], 1 }

</bundles_post_ra>
